<compile_context>
chip_gen: v6e
topology: v6e:2x2x1
jax: 0.10.0
libtpu: 0.0.40
codegen_flags: <defaults>
</compile_context>

<pallas_src>
import functools

import jax
import jax.numpy as jnp
from jax.experimental import pallas as pl
from jax.experimental.pallas import tpu as pltpu


def _gdl_partial_sums_kernel(x_ref, t_ref, st_ref, sx_ref, sxt_ref, *,
                             lane_dense, mask_last, last_valid):
    """Accumulate per-channel partial sums (sum t, sum x, sum x*t).

    lane_dense=True : x_ref/t_ref are (C, rows_tile, 128); accumulators (C, 128).
    lane_dense=False: x_ref/t_ref are (C, tile_s);         accumulators (C, 1).
    Only the last spatial tile is masked (and only when mask_last is True).
    """
    si = pl.program_id(1)
    s_last = pl.num_programs(1) - 1

    @pl.when(si == 0)
    def _init():
        st_ref[...] = jnp.zeros_like(st_ref)
        sx_ref[...] = jnp.zeros_like(sx_ref)
        sxt_ref[...] = jnp.zeros_like(sxt_ref)

    def _accumulate(masked):
        x = x_ref[...].astype(jnp.float32)
        t = t_ref[...].astype(jnp.float32)
        if masked:
            axis = 1 if lane_dense else (x.ndim - 1)
            idx = jax.lax.broadcasted_iota(jnp.int32, x.shape, dimension=axis)
            valid = idx < last_valid
            x = jnp.where(valid, x, 0.0)
            t = jnp.where(valid, t, 0.0)
        if lane_dense:
            # (C, rows_tile, 128) -> (C, 128) lane-partial sums.
            st_ref[...] += jnp.sum(t, axis=1)
            sx_ref[...] += jnp.sum(x, axis=1)
            sxt_ref[...] += jnp.sum(x * t, axis=1)
        else:
            # (C, tile_s) -> (C, 1) per-channel sums (rare fallback path).
            st_ref[...] += jnp.sum(t, axis=-1, keepdims=True)
            sx_ref[...] += jnp.sum(x, axis=-1, keepdims=True)
            sxt_ref[...] += jnp.sum(x * t, axis=-1, keepdims=True)

    if mask_last:
        @pl.when(si != s_last)
        def _full_tile():
            _accumulate(False)

        @pl.when(si == s_last)
        def _tail_tile():
            _accumulate(True)
    else:
        _accumulate(False)


def generalized_dice_loss(inp, target, epsilon=1e-6,
                          vmem_budget_bytes=6 * 1024 * 1024,
                          tile_rows=None, tile_s=None):
    """JAX/Pallas equivalent of GeneralizedDiceLoss().forward(input, target)."""
    assert inp.shape == target.shape, "'input' and 'target' must have the same shape"
    assert inp.ndim >= 2
    N, C = int(inp.shape[0]), int(inp.shape[1])
    S = 1
    for d in inp.shape[2:]:
        S *= int(d)
    S = max(S, 1)

    x_bytes = jnp.dtype(inp.dtype).itemsize
    t_bytes = jnp.dtype(target.dtype).itemsize
    per_elem_bytes = x_bytes + t_bytes
    # Sublane multiple for a non-full second-minor block dim (8 f32, 16 bf16, ...).
    sub_mult = 8 * max(1, 4 // max(1, min(x_bytes, t_bytes)))

    lane_dense = (S % 128 == 0) and (S >= 128)

    if lane_dense:
        R = S // 128
        # Free metadata reshapes (trailing dims are contiguous in NCHW...).
        x = inp.reshape(N, C, R, 128)
        t = target.reshape(N, C, R, 128)
        if tile_rows is None:
            rows_budget = max(1, vmem_budget_bytes
                              // (C * 128 * max(x_bytes, t_bytes)))
            tile_rows = max(sub_mult, (rows_budget // sub_mult) * sub_mult)
        else:
            tile_rows = max(sub_mult, (int(tile_rows) // sub_mult) * sub_mult)
        if tile_rows >= R:
            tile_rows = R                      # single full block (any size ok)
        n_s = pl.cdiv(R, tile_rows)
        last_valid = R - (n_s - 1) * tile_rows
        mask_last = (R % tile_rows) != 0
        block_elems = C * tile_rows * 128
        in_spec = pl.BlockSpec((None, C, tile_rows, 128),
                               lambda n, s: (n, 0, s, 0))
        acc_w = 128
    else:
        # Fallback: S not divisible by 128 (e.g. odd spatial sizes, S == 1).
        x = inp.reshape(N, C, S)
        t = target.reshape(N, C, S)
        if tile_s is None:
            tile_s = (vmem_budget_bytes // (C * max(x_bytes, t_bytes)) // 128) * 128
            tile_s = max(128, tile_s)
        else:
            tile_s = max(128, (int(tile_s) // 128) * 128)
        if tile_s >= S:
            tile_s = S                         # single full block (any size ok)
        n_s = pl.cdiv(S, tile_s)
        last_valid = S - (n_s - 1) * tile_s
        mask_last = (S % tile_s) != 0
        block_elems = C * tile_s
        in_spec = pl.BlockSpec((None, C, tile_s), lambda n, s: (n, 0, s))
        acc_w = 1

    grid = (N, n_s)

    kernel = functools.partial(
        _gdl_partial_sums_kernel,
        lane_dense=lane_dense, mask_last=mask_last, last_valid=int(last_valid))

    out_shape = tuple(jax.ShapeDtypeStruct((N, C, acc_w), jnp.float32)
                      for _ in range(3))
    out_spec = pl.BlockSpec((None, C, acc_w), lambda n, s: (n, 0, 0))

    # 2 inputs x 2 pipeline buffers + output accumulator blocks + slack.
    in_block_bytes = block_elems * per_elem_bytes
    vmem_limit = max(32 * 1024 * 1024,
                     2 * in_block_bytes + 3 * 2 * C * acc_w * 4 + 8 * 1024 * 1024)

    st, sx, sxt = pl.pallas_call(
        kernel,
        out_shape=out_shape,
        grid_spec=pltpu.PrefetchScalarGridSpec(
            num_scalar_prefetch=0,
            grid=grid,
            in_specs=[in_spec, in_spec],
            out_specs=[out_spec, out_spec, out_spec],
        ),
        compiler_params=pltpu.CompilerParams(
            # Batch axis "parallel" -> megacore split on v7x; spatial reduction
            # axis last and "arbitrary" (output blocks are resident across it).
            dimension_semantics=("parallel", "arbitrary"),
            vmem_limit_bytes=int(vmem_limit),
        ),
        cost_estimate=pl.CostEstimate(
            flops=4 * N * C * S,
            transcendentals=0,
            bytes_accessed=int(inp.size) * x_bytes + int(target.size) * t_bytes
            + 3 * N * C * acc_w * 4,
        ),
    )(x, t)

    # Tiny finalize in plain JAX: reduce lane/batch partials, dice math.
    st = jnp.sum(st, axis=(0, 2))   # (C,)
    sx = jnp.sum(sx, axis=(0, 2))
    sxt = jnp.sum(sxt, axis=(0, 2))

    if C == 1:
        # Binary case: background channel (1-x, 1-t) sums derived analytically.
        m = jnp.float32(N * S)
        st_b = m - st
        sx_b = m - sx
        sxt_b = m - sx - st + sxt           # sum((1-x)*(1-t))
        st = jnp.concatenate([st, st_b])
        sx = jnp.concatenate([sx, sx_b])
        sxt = jnp.concatenate([sxt, sxt_b])

    w = 1.0 / jnp.maximum(st * st, epsilon)
    intersect = sxt * w
    denominator = jnp.maximum((sx + st) * w, epsilon)
    dice = 2.0 * (jnp.sum(intersect) / jnp.sum(denominator))
    return 1.0 - dice


def _reference_gdl(inp, target, epsilon=1e-6):
    """Pure-JAX reference mirroring the PyTorch module, for verification."""
    C = inp.shape[1]
    axis_order = (1, 0) + tuple(range(2, inp.ndim))
    x = jnp.transpose(inp, axis_order).reshape(C, -1).astype(jnp.float32)
    t = jnp.transpose(target, axis_order).reshape(C, -1).astype(jnp.float32)
    if C == 1:
        x = jnp.concatenate([x, 1 - x], axis=0)
        t = jnp.concatenate([t, 1 - t], axis=0)
    w_l = 1.0 / jnp.maximum(jnp.sum(t, -1) ** 2, epsilon)
    intersect = jnp.sum(x * t, -1) * w_l
    denominator = jnp.maximum(jnp.sum(x + t, -1) * w_l, epsilon)
    dice = 2.0 * (jnp.sum(intersect) / jnp.sum(denominator))
    return 1.0 - dice


if __name__ == "__main__":
    key = jax.random.PRNGKey(0)
    ks = jax.random.split(key, 8)

    # Case 1: multi-class NCHW, S % 128 == 0 -> lane-dense path, single block.
    N, C, H, W = 2, 4, 16, 16
    x1 = jax.nn.sigmoid(jax.random.normal(ks[0], (N, C, H, W), dtype=jnp.float32))
    lab1 = jax.random.randint(ks[1], (N, H, W), 0, C)
    t1 = jnp.transpose(jax.nn.one_hot(lab1, C, dtype=jnp.float32), (0, 3, 1, 2))
    out1 = jax.block_until_ready(generalized_dice_loss(x1, t1))
    ref1 = jax.block_until_ready(_reference_gdl(x1, t1))
    assert jnp.allclose(out1, ref1, rtol=1e-5, atol=1e-6), (out1, ref1)

    # Case 2: odd spatial size -> fallback (C, tile_s) path with a masked tail
    # (mask only applied on the last tile).
    N2, C2, H2, W2 = 2, 3, 15, 15
    x2 = jax.nn.sigmoid(jax.random.normal(ks[2], (N2, C2, H2, W2), dtype=jnp.float32))
    lab2 = jax.random.randint(ks[3], (N2, H2, W2), 0, C2)
    t2 = jnp.transpose(jax.nn.one_hot(lab2, C2, dtype=jnp.float32), (0, 3, 1, 2))
    out2 = jax.block_until_ready(generalized_dice_loss(x2, t2, tile_s=128))
    ref2 = jax.block_until_ready(_reference_gdl(x2, t2))
    assert jnp.allclose(out2, ref2, rtol=1e-5, atol=1e-6), (out2, ref2)

    # Case 3: binary (C == 1) -> analytic background channel in the finalize.
    N3, C3, H3, W3 = 2, 1, 16, 16
    x3 = jax.nn.sigmoid(jax.random.normal(ks[4], (N3, C3, H3, W3), dtype=jnp.float32))
    t3 = (x3 > 0.5).astype(jnp.float32)
    out3 = jax.block_until_ready(generalized_dice_loss(x3, t3))
    ref3 = jax.block_until_ready(_reference_gdl(x3, t3))
    assert jnp.allclose(out3, ref3, rtol=1e-5, atol=1e-6), (out3, ref3)

    # Case 4: lane-dense path with multiple row tiles and a masked partial
    # last tile (S = 24*80 = 1920 = 15*128, forced rows_tile = 8).
    N4, C4, H4, W4 = 1, 2, 24, 80
    x4 = jax.nn.sigmoid(jax.random.normal(ks[5], (N4, C4, H4, W4), dtype=jnp.float32))
    lab4 = jax.random.randint(ks[6], (N4, H4, W4), 0, C4)
    t4 = jnp.transpose(jax.nn.one_hot(lab4, C4, dtype=jnp.float32), (0, 3, 1, 2))
    out4 = jax.block_until_ready(generalized_dice_loss(x4, t4, tile_rows=8))
    ref4 = jax.block_until_ready(_reference_gdl(x4, t4))
    assert jnp.allclose(out4, ref4, rtol=1e-5, atol=1e-6), (out4, ref4)

    # Case 5: bf16 inputs (in-kernel cast to f32 accumulation).
    x5 = x1.astype(jnp.bfloat16)
    t5 = t1.astype(jnp.bfloat16)
    out5 = jax.block_until_ready(generalized_dice_loss(x5, t5))
    ref5 = jax.block_until_ready(_reference_gdl(x5, t5))
    assert jnp.allclose(out5, ref5, rtol=1e-4, atol=1e-5), (out5, ref5)

    print("KERNEL_OK")
</pallas_src>

<mosaic_0001>
module attributes {stable_mosaic.version = 11 : i64} {
  func.func @_gdl_partial_sums_kernel(%arg0: i32, %arg1: i32, %arg2: memref<1x4x2x128xf32, #tpu.memory_space<vmem>>, %arg3: memref<1x4x2x128xf32, #tpu.memory_space<vmem>>, %arg4: memref<1x4x128xf32, #tpu.memory_space<vmem>>, %arg5: memref<1x4x128xf32, #tpu.memory_space<vmem>>, %arg6: memref<1x4x128xf32, #tpu.memory_space<vmem>>) attributes {dimension_semantics = [#tpu.dimension_semantics<parallel>, #tpu.dimension_semantics<arbitrary>], iteration_bounds = array<i64: 2, 1>, scalar_prefetch = 0 : i64, scratch_operands = 0 : i64, tpu.core_type = #tpu.core_type<tc>, window_params = [{transform_indices = @transform_0, window_bounds = array<i64: 1, 4, 2, 128>}, {transform_indices = @transform_1, window_bounds = array<i64: 1, 4, 2, 128>}, {transform_indices = @transform_2, window_bounds = array<i64: 1, 4, 128>}, {transform_indices = @transform_3, window_bounds = array<i64: 1, 4, 128>}, {transform_indices = @transform_4, window_bounds = array<i64: 1, 4, 128>}]} {
    %c0_i32 = arith.constant 0 : i32
    %0 = arith.cmpi eq, %arg1, %c0_i32 : i32
    %1 = arith.extui %0 : i1 to i32
    %c0_i32_0 = arith.constant 0 : i32
    %2 = arith.cmpi ne, %1, %c0_i32_0 : i32
    scf.if %2 {
      %cst_28 = arith.constant 0.000000e+00 : f32
      %29 = vector.broadcast %cst_28 : f32 to vector<4x128xf32>
      %c0_29 = arith.constant 0 : index
      %c0_30 = arith.constant 0 : index
      %c0_31 = arith.constant 0 : index
      %30 = vector.load %arg4[%c0_29, %c0_30, %c0_31] : memref<1x4x128xf32, #tpu.memory_space<vmem>>, vector<1x4x128xf32>
      %31 = vector.shape_cast %30 : vector<1x4x128xf32> to vector<4x128xf32>
      %32 = vector.shape_cast %29 : vector<4x128xf32> to vector<1x4x128xf32>
      tpu.vector_store %arg4[%c0_29, %c0_30, %c0_31], %32 {strides = array<i32>} : memref<1x4x128xf32, #tpu.memory_space<vmem>>, vector<1x4x128xf32>,
      %cst_32 = arith.constant 0.000000e+00 : f32
      %33 = vector.broadcast %cst_32 : f32 to vector<4x128xf32>
      %c0_33 = arith.constant 0 : index
      %c0_34 = arith.constant 0 : index
      %c0_35 = arith.constant 0 : index
      %34 = vector.load %arg5[%c0_33, %c0_34, %c0_35] : memref<1x4x128xf32, #tpu.memory_space<vmem>>, vector<1x4x128xf32>
      %35 = vector.shape_cast %34 : vector<1x4x128xf32> to vector<4x128xf32>
      %36 = vector.shape_cast %33 : vector<4x128xf32> to vector<1x4x128xf32>
      tpu.vector_store %arg5[%c0_33, %c0_34, %c0_35], %36 {strides = array<i32>} : memref<1x4x128xf32, #tpu.memory_space<vmem>>, vector<1x4x128xf32>,
      %cst_36 = arith.constant 0.000000e+00 : f32
      %37 = vector.broadcast %cst_36 : f32 to vector<4x128xf32>
      %c0_37 = arith.constant 0 : index
      %c0_38 = arith.constant 0 : index
      %c0_39 = arith.constant 0 : index
      %38 = vector.load %arg6[%c0_37, %c0_38, %c0_39] : memref<1x4x128xf32, #tpu.memory_space<vmem>>, vector<1x4x128xf32>
      %39 = vector.shape_cast %38 : vector<1x4x128xf32> to vector<4x128xf32>
      %40 = vector.shape_cast %37 : vector<4x128xf32> to vector<1x4x128xf32>
      tpu.vector_store %arg6[%c0_37, %c0_38, %c0_39], %40 {strides = array<i32>} : memref<1x4x128xf32, #tpu.memory_space<vmem>>, vector<1x4x128xf32>,
    } else {
    }
    %c0 = arith.constant 0 : index
    %c0_1 = arith.constant 0 : index
    %c0_2 = arith.constant 0 : index
    %c0_3 = arith.constant 0 : index
    %3 = vector.load %arg2[%c0, %c0_1, %c0_2, %c0_3] : memref<1x4x2x128xf32, #tpu.memory_space<vmem>>, vector<1x4x2x128xf32>
    %4 = vector.shape_cast %3 : vector<1x4x2x128xf32> to vector<4x2x128xf32>
    %c0_4 = arith.constant 0 : index
    %c0_5 = arith.constant 0 : index
    %c0_6 = arith.constant 0 : index
    %c0_7 = arith.constant 0 : index
    %5 = vector.load %arg3[%c0_4, %c0_5, %c0_6, %c0_7] : memref<1x4x2x128xf32, #tpu.memory_space<vmem>>, vector<1x4x2x128xf32>
    %6 = vector.shape_cast %5 : vector<1x4x2x128xf32> to vector<4x2x128xf32>
    %c0_8 = arith.constant 0 : index
    %c0_9 = arith.constant 0 : index
    %c0_10 = arith.constant 0 : index
    %7 = vector.load %arg4[%c0_8, %c0_9, %c0_10] : memref<1x4x128xf32, #tpu.memory_space<vmem>>, vector<1x4x128xf32>
    %8 = vector.shape_cast %7 : vector<1x4x128xf32> to vector<4x128xf32>
    %cst = arith.constant dense<0.000000e+00> : vector<4x128xf32>
    %9 = vector.multi_reduction <add>, %6, %cst [1] : vector<4x2x128xf32> to vector<4x128xf32>
    %10 = arith.addf %8, %9 : vector<4x128xf32>
    %c0_11 = arith.constant 0 : index
    %c0_12 = arith.constant 0 : index
    %c0_13 = arith.constant 0 : index
    %11 = vector.load %arg4[%c0_11, %c0_12, %c0_13] : memref<1x4x128xf32, #tpu.memory_space<vmem>>, vector<1x4x128xf32>
    %12 = vector.shape_cast %11 : vector<1x4x128xf32> to vector<4x128xf32>
    %13 = vector.shape_cast %10 : vector<4x128xf32> to vector<1x4x128xf32>
    tpu.vector_store %arg4[%c0_11, %c0_12, %c0_13], %13 {strides = array<i32>} : memref<1x4x128xf32, #tpu.memory_space<vmem>>, vector<1x4x128xf32>,
    %c0_14 = arith.constant 0 : index
    %c0_15 = arith.constant 0 : index
    %c0_16 = arith.constant 0 : index
    %14 = vector.load %arg5[%c0_14, %c0_15, %c0_16] : memref<1x4x128xf32, #tpu.memory_space<vmem>>, vector<1x4x128xf32>
    %15 = vector.shape_cast %14 : vector<1x4x128xf32> to vector<4x128xf32>
    %cst_17 = arith.constant dense<0.000000e+00> : vector<4x128xf32>
    %16 = vector.multi_reduction <add>, %4, %cst_17 [1] : vector<4x2x128xf32> to vector<4x128xf32>
    %17 = arith.addf %15, %16 : vector<4x128xf32>
    %c0_18 = arith.constant 0 : index
    %c0_19 = arith.constant 0 : index
    %c0_20 = arith.constant 0 : index
    %18 = vector.load %arg5[%c0_18, %c0_19, %c0_20] : memref<1x4x128xf32, #tpu.memory_space<vmem>>, vector<1x4x128xf32>
    %19 = vector.shape_cast %18 : vector<1x4x128xf32> to vector<4x128xf32>
    %20 = vector.shape_cast %17 : vector<4x128xf32> to vector<1x4x128xf32>
    tpu.vector_store %arg5[%c0_18, %c0_19, %c0_20], %20 {strides = array<i32>} : memref<1x4x128xf32, #tpu.memory_space<vmem>>, vector<1x4x128xf32>,
    %c0_21 = arith.constant 0 : index
    %c0_22 = arith.constant 0 : index
    %c0_23 = arith.constant 0 : index
    %21 = vector.load %arg6[%c0_21, %c0_22, %c0_23] : memref<1x4x128xf32, #tpu.memory_space<vmem>>, vector<1x4x128xf32>
    %22 = vector.shape_cast %21 : vector<1x4x128xf32> to vector<4x128xf32>
    %23 = arith.mulf %4, %6 : vector<4x2x128xf32>
    %cst_24 = arith.constant dense<0.000000e+00> : vector<4x128xf32>
    %24 = vector.multi_reduction <add>, %23, %cst_24 [1] : vector<4x2x128xf32> to vector<4x128xf32>
    %25 = arith.addf %22, %24 : vector<4x128xf32>
    %c0_25 = arith.constant 0 : index
    %c0_26 = arith.constant 0 : index
    %c0_27 = arith.constant 0 : index
    %26 = vector.load %arg6[%c0_25, %c0_26, %c0_27] : memref<1x4x128xf32, #tpu.memory_space<vmem>>, vector<1x4x128xf32>
    %27 = vector.shape_cast %26 : vector<1x4x128xf32> to vector<4x128xf32>
    %28 = vector.shape_cast %25 : vector<4x128xf32> to vector<1x4x128xf32>
    tpu.vector_store %arg6[%c0_25, %c0_26, %c0_27], %28 {strides = array<i32>} : memref<1x4x128xf32, #tpu.memory_space<vmem>>, vector<1x4x128xf32>,
    return
  }
  func.func @transform_0(%arg0: i32, %arg1: i32) -> (i32, i32, i32, i32) {
    %c0_i32 = arith.constant 0 : i32
    %c0_i32_0 = arith.constant 0 : i32
    %c0_i32_1 = arith.constant 0 : i32
    return %arg0, %c0_i32, %arg1, %c0_i32_0 : i32, i32, i32, i32
  }
  func.func @transform_1(%arg0: i32, %arg1: i32) -> (i32, i32, i32, i32) {
    %c0_i32 = arith.constant 0 : i32
    %c0_i32_0 = arith.constant 0 : i32
    %c0_i32_1 = arith.constant 0 : i32
    return %arg0, %c0_i32, %arg1, %c0_i32_0 : i32, i32, i32, i32
  }
  func.func @transform_2(%arg0: i32, %arg1: i32) -> (i32, i32, i32) {
    %c0_i32 = arith.constant 0 : i32
    %c0_i32_0 = arith.constant 0 : i32
    %c0_i32_1 = arith.constant 0 : i32
    return %arg0, %c0_i32, %c0_i32_0 : i32, i32, i32
  }
  func.func @transform_3(%arg0: i32, %arg1: i32) -> (i32, i32, i32) {
    %c0_i32 = arith.constant 0 : i32
    %c0_i32_0 = arith.constant 0 : i32
    %c0_i32_1 = arith.constant 0 : i32
    return %arg0, %c0_i32, %c0_i32_0 : i32, i32, i32
  }
  func.func @transform_4(%arg0: i32, %arg1: i32) -> (i32, i32, i32) {
    %c0_i32 = arith.constant 0 : i32
    %c0_i32_0 = arith.constant 0 : i32
    %c0_i32_1 = arith.constant 0 : i32
    return %arg0, %c0_i32, %c0_i32_0 : i32, i32, i32
  }
}

</mosaic_0001>

<bundles_post_ra>
// kernel: tpu_custom_call.1
= control target key start
LH: loop header
LB: loop body
LE: loop exit
PB: predicated region body
PF: predicated region fallthrough
CT: control target
= control target key end

     0   :  { %s1278_s0 = inlined_call_operand.hbm [shape: f32[2,4,2,128], index: 0, kind: input, shape index: {}]   ;;  %s1279_s1 = inlined_call_operand.hbm [shape: f32[2,4,2,128], index: 1, kind: input, shape index: {}]   ;;  %s1280_s2 = inlined_call_operand.hbm [shape: f32[2,4,128], index: 2, kind: output, shape index: {0}]   ;;  %s1281_s3 = inlined_call_operand.hbm [shape: f32[2,4,128], index: 3, kind: output, shape index: {1}]   ;;  %s1282_s4 = inlined_call_operand.hbm [shape: f32[2,4,128], index: 4, kind: output, shape index: {2}]  }
   0x1   :  { %1285 = sst [smem:[#allocation17_spill]] %s1278_s0 }
   0x2   :  { %10 = vsyncpa [#allocation3], 0 }
   0x3   :  { %12 = vsyncpa [#allocation3 + $0x1], 0 }
   0x4   :  { %13 = vsyncpa [#allocation6], 0 }
   0x5   :  { %15 = vsyncpa [#allocation6 + $0x1], 0 }
   0x6   :  { %16 = vsyncpa [#allocation4], 0 }
   0x7   :  { %18 = vsyncpa [#allocation4 + $0x1], 0 }
   0x8   :  { %19 = vsyncpa [#allocation9], 0 }
   0x9   :  { %21 = vsyncpa [#allocation9 + $0x1], 0  ;;  %s985_s15 = smov 0   ;;  %s987_s16 = smov 0  }
   0xa   :  { %s989_s17 = smov 0   ;;  %s991_s18 = smov 0  }
   0xb   :  { %s993_s19 = smov 0   ;;  %s995_s20 = smov 0  }
   0xc LB: > { %s1016_s21 = sadd.s32 4294967295, %s950_s20   ;;  %s1283_s22 = sadd.s32 4294967294, %s950_s20   ;;  %s950_s20 = sphi %s995_s20, %s27_s20   ;;  %s946_s19 = sphi %s993_s19, %s1303_s19   ;;  %s942_s18 = sphi %s991_s18, %s1302_s18   ;;  %s938_s17 = sphi %s989_s17, %s1301_s17   ;;  %s934_s16 = sphi %s987_s16, %s1300_s16   ;;  %s930_s15 = sphi %s985_s15, %s1299_s15  }
   0xd   : > { %s39_s23 = sadd.s32 1, %s946_s19  ;;  %s48_s24 = sadd.s32 1, %s938_s17 }
   0xe   : > { %p41_p0 = scmp.ge.s32.totalorder %s39_s23, 2  ;;  %p55_p1 = scmp.ne.s32.totalorder %s938_s17, %s934_s16 }
   0xf   : > { %p56_p2 = scmp.eq.s32.totalorder %s950_s20, 0  ;;  %p61_p3 = scmp.ne.s32.totalorder %s934_s16, %s930_s15 }
  0x10   : > { %s1305_s23 = smov (%p41_p0, %s39_s23), 0  ;;  %p62_p5 = scmp.eq.s32.totalorder %s1016_s21, 0 }
  0x11   : > { %1286 = sst [smem:[#allocation15_spill]] %s1305_s23  ;;  %p1028_p4 = por %p56_p2, %p55_p1 }
  0x12   : > { %s43_s26 = ssub.s32 %s946_s19, %s1305_s23  ;;  %p113_p6 = scmp.eq.s32.totalorder %s1016_s21, 1 }
  0x13   : > { %p46_p7 = scmp.eq.s32.totalorder %s43_s26, 0  ;;  %p1036_p8 = por %p62_p5, %p61_p3 }
  0x14   : > { %p1040_p9 = por %p113_p6, %p55_p1  ;;  %p119_p10 = scmp.eq.s32.totalorder %s1283_s22, 1 }
  0x15   : > { %s1047_s29 = scalar_select %p46_p7, %s938_s17, %s48_s24  }
  0x16   : > { %p1049_p11 = por %p119_p10, %p61_p3  ;;  %p701_p13 = scmp.lt.s32.totalorder %s950_s20, 2 }
  0x17   : > { %1290 = sst [smem:[#allocation16_spill]] %s1047_s29  ;;  %s1056_s5 = sand.u32 1, %s938_s17  }
  0x18   : > { %s652_s6 = sshll.u32 %s1056_s5, 3  ;;  %s672_s7 = sshll.u32 %s946_s19, 7 }
  0x19   : > { %s1292_s0 = sld [smem:[#allocation17_spill]]  ;;  %s195_s11 = scalar_lea.vmem [#allocation2], %s652_s6 }
  0x1a   : > { %s203_s12 = sshll.u32 %s195_s11, 4  ;;  %p1069_p0 = pnand %p701_p13, %p1028_p4  ;;  %s204_s12 = int_to_ptr.vmem [resolvable:$true] %s203_s12 }
  0x1b   : > { %p658_p1 = scmp.ge.s32.totalorder %s950_s20, 1  ;;  %s192_s14 = scalar_lea.sflag [#allocation3], %s1056_s5 }
  0x1c   : > { %p756_p2 = pneg %p1069_p0  ;;  %s767_s24 = scalar_lea.vmem %s204_s12, 128 }
  0x1d   : > { %p768_p3 = scmp.ne.s32.totalorder %s204_s12, %s767_s24  ;;  %s952_s26 = smov [#allocation2]  }
  0x1e   : > { %s772_s8 = sshll.u32 %s952_s26, 4  ;;  %s773_s8 = int_to_ptr.vmem [resolvable:$false] %s772_s8 }
  0x1f   : > { %s202_s10 = scalar_lea.hbm %s1292_s0, %s672_s7  ;;  %p770_p5 = pnand %p768_p3, %p756_p2 }
  0x20   : > { %s774_s25 = scalar_lea.vmem %s773_s8, 256  ;;  %p775_p4 = scmp.lt.s32.totalorder %s204_s12, %s773_s8 }
  0x21   : > { %p771_p6 = pneg %p770_p5  ;;  %p776_p7 = scmp.lt.s32.totalorder %s774_s25, %s767_s24 }
  0x23   : > { %p777_p10 = por %p776_p7, %p775_p4 }
  0x25   : > { %p778_p13 = pnand %p777_p10, %p771_p6 }
  0x27   : > { %781 = shalt.err (!%p778_p13)
}
  0x28   : > { %s953_s9 = smov 32   ;;  %s954_s11 = smov 2  }
  0x29   : > { %687 = dma.hbm_to_vmem [thread:$0]  (!%p1069_p0), %s202_s10, 128, %s204_s12, %s192_s14, %s953_s9, %s953_s9, %s954_s11  }
  0x2a   : > { %p233_p3 = scmp.lt.s32.totalorder %s950_s20, 3  ;;  %s224_s24 = scalar_lea.hbm %s1279_s1, %s672_s7 }
  0x2b   : > { %s217_s25 = scalar_lea.vmem [#allocation5], %s652_s6  ;;  %s214_s23 = scalar_lea.sflag [#allocation6], %s1056_s5 }
  0x2c   : > { %p1090_p5 = pnand %p658_p1, %p233_p3  ;;  %s225_s0 = sshll.u32 %s217_s25, 4  ;;  %s226_s0 = int_to_ptr.vmem [resolvable:$true] %s225_s0 }
  0x2d   : > { %s795_s29 = scalar_lea.vmem %s226_s0, 128  ;;  %s955_s10 = smov [#allocation5]  }
  0x2e   : > { %p796_p6 = scmp.ne.s32.totalorder %s226_s0, %s795_s29  ;;  %s800_s12 = sshll.u32 %s955_s10, 4  ;;  %s801_s12 = int_to_ptr.vmem [resolvable:$false] %s800_s12 }
  0x2f   : > { %s802_s22 = scalar_lea.vmem %s801_s12, 256  ;;  %p803_p10 = scmp.lt.s32.totalorder %s226_s0, %s801_s12 }
  0x30   : > { %p798_p4 = pnand %p796_p6, %p756_p2  ;;  %p804_p1 = scmp.lt.s32.totalorder %s802_s22, %s795_s29 }
  0x32   : > { %p799_p7 = pneg %p798_p4  ;;  %p805_p13 = por %p804_p1, %p803_p10 }
  0x34   : > { %p806_p3 = pnand %p805_p13, %p799_p7 }
  0x36   : > { %809 = shalt.err (!%p806_p3)
}
  0x37   : > { %690 = dma.hbm_to_vmem [thread:$0]  (!%p1069_p0), %s224_s24, 128, %s226_s0, %s214_s23, %s953_s9, %s953_s9, %s954_s11  }
  0x38   : > { %237 = sbr.rel (%p1090_p5) target bundleno = 143 (0x8f), region = 28  ;;  %s1105_s5 = sand.u32 (!%p1090_p5), 1, %s934_s16  }
  0x39   : > { %s659_s6 = sshll.u32 (!%p1090_p5), %s1105_s5, 3  ;;  %s240_s7 = scalar_lea.sflag (!%p1090_p5), [#allocation3], %s1105_s5 }
  0x3a   : > { %s243_s14 = scalar_lea.vmem (!%p1090_p5), [#allocation2], %s659_s6 }
  0x3d   : > { %913 = dma.done.wait (%p1036_p8), %s240_s7, 128  }
  0x3e   : > { %915 = vsyncadd (%p1036_p8), %s240_s7, 4294967168  ;;  %s249_s0 = scalar_lea.sflag [#allocation6], %s1105_s5  ;;  %s1114_s23 = scalar_lea.vmem [#allocation5], %s659_s6 }
  0x3f   : > { %917 = dma.done.wait (%p1036_p8), %s249_s0, 128  }
  0x40   : > { %919 = vsyncadd (%p1036_p8), %s249_s0, 4294967168  ;;  %s661_s29 = sshll.u32 %s1105_s5, 2  ;;  %v956_v0 = vmov 0.0   ;;  %vm308_vm0 = vcmask 1041408   ;;  %v299_v1 = vld [vmem:[%s243_s14] sm:$0x3] }
  0x41   : > { %s1121_s13 = scalar_lea.vmem [#allocation8], %s661_s29  ;;  %s1124_s9 = scalar_lea.vmem [#allocation7], %s661_s29  ;;  %v300_v2 = vld [vmem:[%s243_s14 + $0x2] sm:$0x3]  ;;  %v301_v3 = vld [vmem:[%s243_s14 + $0x4] sm:$0x3] }
  0x42   : > { %297 = vst [vmem:[%s1121_s13] sm:$0xf] %v956_v0  ;;  %296 = vst [vmem:[%s1124_s9] sm:$0xf] %v956_v0  ;;  %s1127_s11 = scalar_lea.vmem [#allocation10], %s661_s29  ;;  %v1130_v4 = vld [vmem:[%s243_s14 + $0x6] sm:$0x3]  ;;  %v351_v5 = vsel %vm308_vm0, %v299_v1, 0.0 }
  0x43   : > { %298 = vst [vmem:[%s1127_s11] sm:$0xf] %v956_v0  ;;  %v358_v6 = vsel %vm308_vm0, %v300_v2, 0.0  ;;  %v365_v7 = vsel %vm308_vm0, %v301_v3, 0.0  ;;  %v352_v8 = vrot.slane %v351_v5, 4  ;;  %v372_v11 = vsel %vm308_vm0, %v1130_v4, 0.0  ;;  %s437_s27 = sand.u32 1, %s1016_s21  }
  0x44   : > { %v359_v9 = vrot.slane %v358_v6, 4  ;;  %v366_v10 = vrot.slane %v365_v7, 4  ;;  %vm341_vm1 = vcmask 1041409   ;;  %v373_v12 = vrot.slane %v372_v11, 4  ;;  %v303_v13 = vld [vmem:[%s1114_s23] sm:$0x3] }
  0x45   : > { %vm343_vm2 = vcmask 1042434   ;;  %v353_v14 = vadd.f32 %v352_v8, %v351_v5  ;;  %v304_v17 = vld [vmem:[%s1114_s23 + $0x2] sm:$0x3]  ;;  %v305_v18 = vld [vmem:[%s1114_s23 + $0x4] sm:$0x3]  ;;  %v390_v19 = vmul.f32 %v303_v13, %v299_v1  ;;  %vm345_vm3 = vcmask 1043459  }
  0x46   : > { %v360_v15 = vadd.f32 %v359_v9, %v358_v6  ;;  %v367_v16 = vadd.f32 %v366_v10, %v365_v7  ;;  %v374_v20 = vadd.f32 %v373_v12, %v372_v11  ;;  %v309_v21 = vsel %vm308_vm0, %v303_v13, 0.0  ;;  %v306_v27 = vld [vmem:[%s1114_s23 + $0x6] sm:$0x3]  ;;  %s1149_s26 = sshll.u32 %s942_s18, 6  ;;  %s469_s24 = sshll.u32 %s1121_s13, 4  ;;  %s1162_s24 = int_to_ptr.vmem [resolvable:$true] %s469_s24 }
  0x47   : > { %v316_v22 = vsel %vm308_vm0, %v304_v17, 0.0  ;;  %v323_v23 = vsel %vm308_vm0, %v305_v18, 0.0  ;;  %v354_v24 = vrot.slane %v353_v14, 2  ;;  %v310_v28 = vrot.slane %v309_v21, 4  ;;  %s1160_s25 = scalar_lea.hbm %s1281_s3, %s1149_s26  ;;  %s456_s10 = sshll.u32 %s1124_s9, 4  ;;  %s1206_s10 = int_to_ptr.vmem [resolvable:$true] %s456_s10 }
  0x48   : > { %v361_v25 = vrot.slane %v360_v15, 2  ;;  %v368_v26 = vrot.slane %v367_v16, 2  ;;  %v375_v29 = vrot.slane %v374_v20, 2  ;;  %v317_v30 = vrot.slane %v316_v22, 4  ;;  %s1174_s12 = scalar_lea.sflag [#allocation9], %s437_s27  ;;  %s810_s22 = scalar_lea.vmem %s1162_s24, 64 }
  0x49   : > { %v324_v31 = vrot.slane %v323_v23, 4  ;;  %v330_v32 = vsel %vm308_vm0, %v306_v27, 0.0  ;;  %v355_v33 = vadd.f32 %v354_v24, %v353_v14  ;;  %v311_v36 = vadd.f32 %v310_v28, %v309_v21  ;;  %v350_v57 = vld [vmem:[%s1121_s13] sm:$0xf]  ;;  %v307_v14 = vld [vmem:[%s1124_s9] sm:$0xf]  ;;  %p811_p8 = scmp.ne.s32.totalorder %s1162_s24, %s810_s22 }
  0x4a   : > { %v362_v34 = vadd.f32 %v361_v25, %v360_v15  ;;  %v369_v35 = vadd.f32 %v368_v26, %v367_v16  ;;  %v376_v37 = vadd.f32 %v375_v29, %v374_v20  ;;  %v318_v38 = vadd.f32 %v317_v30, %v316_v22  ;;  %s957_s6 = smov [#allocation8]  }
  0x4b   : > { %v325_v39 = vadd.f32 %v324_v31, %v323_v23  ;;  %v331_v40 = vrot.slane %v330_v32, 4  ;;  %v356_v41 = vrot.slane %v355_v33, 1  ;;  %v312_v44 = vrot.slane %v311_v36, 2  ;;  %p812_p0 = pnand %p811_p8, %p1040_p9  ;;  %s814_s7 = sshll.u32 %s957_s6, 4  ;;  %s815_s7 = int_to_ptr.vmem [resolvable:$false] %s814_s7 }
  0x4c   : > { %v363_v42 = vrot.slane %v362_v34, 1  ;;  %v370_v43 = vrot.slane %v369_v35, 1  ;;  %v377_v45 = vrot.slane %v376_v37, 1  ;;  %v319_v46 = vrot.slane %v318_v38, 2  ;;  %s816_s14 = scalar_lea.vmem %s815_s7, 128  ;;  %p817_p5 = scmp.lt.s32.totalorder %s1162_s24, %s815_s7 }
  0x4d   : > { %v326_v47 = vrot.slane %v325_v39, 2  ;;  %v332_v48 = vadd.f32 %v331_v40, %v330_v32  ;;  %v357_v49 = vadd.f32 %v356_v41, %v355_v33  ;;  %v313_v52 = vadd.f32 %v312_v44, %v311_v36  ;;  %p813_p2 = pneg %p812_p0  ;;  %p818_p6 = scmp.lt.s32.totalorder %s816_s14, %s810_s22 }
  0x4e   : > { %v364_v50 = vadd.f32 %v363_v42, %v362_v34  ;;  %v371_v51 = vadd.f32 %v370_v43, %v369_v35  ;;  %v378_v53 = vadd.f32 %v377_v45, %v376_v37  ;;  %v320_v54 = vadd.f32 %v319_v46, %v318_v38 }
  0x4f   : > { %v327_v55 = vadd.f32 %v326_v47, %v325_v39  ;;  %v333_v56 = vrot.slane %v332_v48, 2  ;;  %v314_v59 = vrot.slane %v313_v52, 1  ;;  %v391_v60 = vmul.f32 %v304_v17, %v300_v2  ;;  %p819_p4 = por %p818_p6, %p817_p5 }
  0x50   : > { %v383_v58 = vsel %vm341_vm1, %v364_v50, %v357_v49  ;;  %v392_v61 = vmul.f32 %v305_v18, %v301_v3  ;;  %v321_v63 = vrot.slane %v320_v54, 1  ;;  %v393_v7 = vmul.f32 %v306_v27, %v1130_v4 }
  0x51   : > { %v384_v62 = vsel %vm343_vm2, %v371_v51, %v383_v58  ;;  %v328_v0 = vrot.slane %v327_v55, 1  ;;  %v334_v1 = vadd.f32 %v333_v56, %v332_v48  ;;  %v315_v6 = vadd.f32 %v314_v59, %v313_v52  ;;  %p820_p7 = pnand %p819_p4, %p813_p2 }
  0x52   : > { %v385_v5 = vsel %vm345_vm3, %v378_v53, %v384_v62  ;;  %v394_v8 = vsel %vm308_vm0, %v390_v19, 0.0  ;;  %v322_v3 = vadd.f32 %v321_v63, %v320_v54  ;;  %v401_v4 = vsel %vm308_vm0, %v391_v60, 0.0 }
  0x53   : > { %v387_v2 = vadd.f32 %v385_v5, %v350_v57  ;;  %v329_v9 = vadd.f32 %v328_v0, %v327_v55  ;;  %v335_v10 = vrot.slane %v334_v1, 1  ;;  %v395_v11 = vrot.slane %v394_v8, 4 }
  0x54   : > { %v408_v12 = vsel %vm308_vm0, %v392_v61, 0.0  ;;  %v415_v13 = vsel %vm308_vm0, %v393_v7, 0.0  ;;  %v342_v16 = vsel %vm341_vm1, %v322_v3, %v315_v6  ;;  %v402_v17 = vrot.slane %v401_v4, 4 }
  0x55   : > { %388 = vst [vmem:[%s1121_s13] sm:$0xf] %v387_v2  ;;  %v336_v15 = vadd.f32 %v335_v10, %v334_v1  ;;  %v409_v18 = vrot.slane %v408_v12, 4  ;;  %v344_v19 = vsel %vm343_vm2, %v329_v9, %v342_v16  ;;  %v396_v20 = vadd.f32 %v395_v11, %v394_v8 }
  0x56   : > { %v416_v21 = vrot.slane %v415_v13, 4 }
  0x57   : > { %823 = shalt.err (!%p820_p7)
}
  0x58   : > { %s824_s21 = scalar_lea.hbm %s1160_s25, 64  ;;  %s828_s29 = scalar_lea.hbm %s1281_s3, 128 }
  0x59   : > { %p825_p10 = scmp.ne.s32.totalorder %s1160_s25, %s824_s21  ;;  %p829_p3 = scmp.lt.s32.totalorder %s1160_s25, %s1281_s3 }
  0x5a   : > { %p830_p8 = scmp.lt.s32.totalorder %s828_s29, %s824_s21 }
  0x5b   : > { %p826_p1 = pnand %p825_p10, %p1040_p9 }
  0x5c   : > { %p831_p0 = por %p830_p8, %p829_p3 }
  0x5d   : > { %p827_p13 = pneg %p826_p1 }
  0x5f   : > { %p832_p2 = pnand %p831_p0, %p827_p13 }
  0x61   : > { %835 = shalt.err (!%p832_p2)
}
  0x62   : > { %679 = dma.vmem_to_hbm [thread:$0]  (%p1040_p9), %s1162_s24, 64, %s1160_s25, %s1174_s12   ;;  %v346_v22 = vsel %vm345_vm3, %v336_v15, %v344_v19  ;;  %v403_v23 = vadd.f32 %v402_v17, %v401_v4  ;;  %v410_v24 = vadd.f32 %v409_v18, %v408_v12  ;;  %v397_v26 = vrot.slane %v396_v20, 2 }
  0x63   : > { %v348_v25 = vadd.f32 %v346_v22, %v307_v14  ;;  %v417_v27 = vadd.f32 %v416_v21, %v415_v13  ;;  %s1202_s22 = scalar_lea.hbm %s1280_s2, %s1149_s26  ;;  %s433_s24 = scalar_lea.sflag [#allocation4], %s1105_s5 }
  0x64   : > { %v404_v28 = vrot.slane %v403_v23, 2  ;;  %v411_v29 = vrot.slane %v410_v24, 2  ;;  %v398_v30 = vadd.f32 %v397_v26, %v396_v20  ;;  %s836_s25 = scalar_lea.vmem %s1206_s10, 64  ;;  %s958_s6 = smov [#allocation7]  }
  0x65   : > { %349 = vst [vmem:[%s1124_s9] sm:$0xf] %v348_v25  ;;  %v418_v31 = vrot.slane %v417_v27, 2  ;;  %p837_p5 = scmp.ne.s32.totalorder %s1206_s10, %s836_s25  ;;  %s840_s7 = sshll.u32 %s958_s6, 4  ;;  %s841_s7 = int_to_ptr.vmem [resolvable:$false] %s840_s7 }
  0x66   : > { %v405_v32 = vadd.f32 %v404_v28, %v403_v23  ;;  %v412_v33 = vadd.f32 %v411_v29, %v410_v24  ;;  %s842_s14 = scalar_lea.vmem %s841_s7, 128  ;;  %p843_p7 = scmp.lt.s32.totalorder %s1206_s10, %s841_s7 }
  0x67   : > { %p838_p6 = pnand %p837_p5, %p1040_p9  ;;  %p844_p10 = scmp.lt.s32.totalorder %s842_s14, %s836_s25 }
  0x69   : > { %p839_p4 = pneg %p838_p6  ;;  %p845_p1 = por %p844_p10, %p843_p7 }
  0x6b   : > { %p846_p13 = pnand %p845_p1, %p839_p4 }
  0x6d   : > { %849 = shalt.err (!%p846_p13)
}
  0x6e   : > { %s850_s9 = scalar_lea.hbm %s1202_s22, 64  ;;  %s854_s0 = scalar_lea.hbm %s1280_s2, 128 }
  0x6f   : > { %p851_p3 = scmp.ne.s32.totalorder %s1202_s22, %s850_s9  ;;  %p855_p2 = scmp.lt.s32.totalorder %s1202_s22, %s1280_s2 }
  0x70   : > { %p856_p5 = scmp.lt.s32.totalorder %s854_s0, %s850_s9 }
  0x71   : > { %p852_p8 = pnand %p851_p3, %p1040_p9 }
  0x72   : > { %p857_p6 = por %p856_p5, %p855_p2 }
  0x73   : > { %p853_p0 = pneg %p852_p8 }
  0x75   : > { %p858_p4 = pnand %p857_p6, %p853_p0 }
  0x77   : > { %861 = shalt.err (!%p858_p4)
}
  0x78   : > { %678 = dma.vmem_to_hbm [thread:$0]  (%p1040_p9), %s1206_s10, 64, %s1202_s22, %s433_s24   ;;  %v399_v34 = vrot.slane %v398_v30, 1  ;;  %v419_v35 = vadd.f32 %v418_v31, %v417_v27  ;;  %v406_v36 = vrot.slane %v405_v32, 1  ;;  %v413_v37 = vrot.slane %v412_v33, 1  ;;  %v389_v43 = vld [vmem:[%s1127_s11] sm:$0xf] }
  0x79   : > { %s482_s13 = sshll.u32 %s1127_s11, 4  ;;  %s480_s18 = scalar_lea.hbm %s1282_s4, %s1149_s26  ;;  %s483_s13 = int_to_ptr.vmem [resolvable:$true] %s482_s13 }
  0x7a   : > { %v400_v38 = vadd.f32 %v399_v34, %v398_v30  ;;  %v420_v39 = vrot.slane %v419_v35, 1  ;;  %v407_v40 = vadd.f32 %v406_v36, %v405_v32  ;;  %v414_v41 = vadd.f32 %v413_v37, %v412_v33  ;;  %s862_s8 = scalar_lea.vmem %s483_s13, 64  ;;  %s959_s22 = smov [#allocation10]  }
  0x7b   : > { %p863_p7 = scmp.ne.s32.totalorder %s483_s13, %s862_s8  ;;  %s866_s24 = sshll.u32 %s959_s22, 4  ;;  %s867_s24 = int_to_ptr.vmem [resolvable:$false] %s866_s24 }
  0x7c   : > { %v421_v42 = vadd.f32 %v420_v39, %v419_v35  ;;  %v426_v44 = vsel %vm341_vm1, %v407_v40, %v400_v38  ;;  %s868_s25 = scalar_lea.vmem %s867_s24, 128  ;;  %p869_p13 = scmp.lt.s32.totalorder %s483_s13, %s867_s24 }
  0x7d   : > { %v427_v45 = vsel %vm343_vm2, %v414_v41, %v426_v44  ;;  %p864_p10 = pnand %p863_p7, %p1040_p9  ;;  %p870_p3 = scmp.lt.s32.totalorder %s868_s25, %s862_s8 }
  0x7e   : > { %v428_v46 = vsel %vm345_vm3, %v421_v42, %v427_v45 }
  0x7f   : > { %v430_v47 = vadd.f32 %v428_v46, %v389_v43  ;;  %p865_p1 = pneg %p864_p10  ;;  %p871_p8 = por %p870_p3, %p869_p13 }
  0x81   : > { %431 = vst [vmem:[%s1127_s11] sm:$0xf] %v430_v47  ;;  %p872_p0 = pnand %p871_p8, %p865_p1 }
  0x83   : > { %875 = shalt.err (!%p872_p0)
}
  0x84   : > { %s876_s6 = scalar_lea.hbm %s480_s18, 64  ;;  %s880_s7 = scalar_lea.hbm %s1282_s4, 128 }
  0x85   : > { %p877_p2 = scmp.ne.s32.totalorder %s480_s18, %s876_s6  ;;  %p881_p4 = scmp.lt.s32.totalorder %s480_s18, %s1282_s4 }
  0x86   : > { %p882_p7 = scmp.lt.s32.totalorder %s880_s7, %s876_s6 }
  0x87   : > { %p878_p5 = pnand %p877_p2, %p1040_p9 }
  0x88   : > { %p883_p10 = por %p882_p7, %p881_p4 }
  0x89   : > { %p879_p6 = pneg %p878_p5 }
  0x8b   : > { %p884_p12 = pnand %p883_p10, %p879_p6 }
  0x8d   : > { %887 = shalt.err (!%p884_p12)
}
  0x8e   : > { %680 = dma.vmem_to_hbm [thread:$0]  (%p1040_p9), %s483_s13, 64, %s480_s18, %s1174_s12  }
  0x8f PF: > { %s494_s5 = sand.u32 1, %s930_s15   ;;  %p1295_p1 = scmp.ge.s32.totalorder %s950_s20, 2 }
  0x90   : > { %s495_s21 = scalar_lea.sflag [#allocation4], %s494_s5 }
  0x91   : > { %p692_p13 = pnand %p1295_p1, %p1049_p11 }
  0x93   : > { %p693_p3 = pneg %p692_p13 }
  0x95   : > { %921 = dma.done.wait (%p693_p3), %s495_s21, 64  }
  0x96   : > { %923 = vsyncadd (%p693_p3), %s495_s21, 4294967232  ;;  %s1296_s0 = sadd.s32 4294967294, %s950_s20  }
  0x97   : > { %s503_s23 = sand.u32 1, %s1296_s0  }
  0x98   : > { %s504_s29 = scalar_lea.sflag [#allocation9], %s503_s23 }
  0x99   : > { %925 = dma.done.wait (%p693_p3), %s504_s29, 128  }
  0x9a   : > { %927 = vsyncadd (%p693_p3), %s504_s29, 4294967168  ;;  %s27_s20 = sadd.s32 1, %s950_s20   ;;  %s1297_s28 = sld [smem:[#allocation16_spill]] }
  0x9b   : > { %p24_p9 = scmp.ge.s32.totalorder %s27_s20, 4   ;;  %s1298_s30 = sld [smem:[#allocation15_spill]] }
  0x9c   : > { %s1299_s15 = smov %s934_s16  ;;  %s1300_s16 = smov %s938_s17 }
  0x9d   : > { %s1302_s18 = smov %s946_s19  ;;  %26 = sbr.rel (!%p24_p9) target bundleno = 12 (0xc), region = 122 }
  0xa0   : > { %s1301_s17 = smov %s1297_s28 }
  0xa1   : > { %s1303_s19 = smov %s1298_s30 }
  0xa2   :  { %518 = vsyncpa [#allocation3], 1 }
  0xa3   :  { %520 = vsyncpa [#allocation3 + $0x1], 1 }
  0xa4   :  { %521 = vsyncpa [#allocation6], 1 }
  0xa5   :  { %523 = vsyncpa [#allocation6 + $0x1], 1 }
  0xa6   :  { %524 = vsyncpa [#allocation4], 1 }
  0xa7   :  { %526 = vsyncpa [#allocation4 + $0x1], 1 }
  0xa8   :  { %527 = vsyncpa [#allocation9], 1 }
  0xa9   :  { %529 = vsyncpa [#allocation9 + $0x1], 1 }

</bundles_post_ra>
